<compile_context>
chip_gen: v7x
topology: tpu7x:2x2x1
jax: 0.10.0
libtpu: 0.0.40
codegen_flags: <defaults>
</compile_context>

<pallas_src>
import functools
import math

import jax
import jax.numpy as jnp
from jax.experimental import pallas as pl
from jax.experimental.pallas import tpu as pltpu


# ----------------------------------------------------------------------------
# Pallas kernel
# ----------------------------------------------------------------------------
def _make_msfb_kernel(num_scales, channels):
    """Fused multi-scale conv + concat + 1x1 fusion conv kernel."""
    S = num_scales
    C = channels

    def kernel(*args):
        # args = [patches_0..S-1, wconv_0..S-1, bconv_0..S-1, wfuse_0..S-1, bfuse, out]
        p_refs = args[0:S]              # each (1, C*k^3, TILE_P)
        wc_refs = args[S:2 * S]         # each (C, C*k^3)
        bc_refs = args[2 * S:3 * S]     # each (C, 1)
        wf_refs = args[3 * S:4 * S]     # each (C, C)   (per-scale chunk of fusion weight)
        bf_ref = args[4 * S]            # (C, 1)
        o_ref = args[4 * S + 1]         # (1, C, TILE_P)

        acc = jnp.zeros(o_ref.shape[1:], jnp.float32)          # (C, TILE_P)
        for s in range(S):
            # branch conv: (C, C*k^3) @ (C*k^3, TILE_P) on the MXU, f32 accumulate
            feat = jnp.dot(wc_refs[s][...], p_refs[s][0],
                           preferred_element_type=jnp.float32)
            feat = feat + bc_refs[s][...]                       # (C,1) lane-broadcast bias
            # fusion 1x1x1 conv contribution of this branch's channel chunk
            acc = acc + jnp.dot(wf_refs[s][...], feat,
                                preferred_element_type=jnp.float32)
        o_ref[0] = (acc + bf_ref[...]).astype(o_ref.dtype)

    return kernel


# ----------------------------------------------------------------------------
# Wrapper
# ----------------------------------------------------------------------------
def _im2col_3d(x, k):
    """x: (B, C, D, H, W) -> patches (B, C*k^3, D*H*W), feature order (c, kd, kh, kw)."""
    B, C, D, H, W = x.shape
    p = k // 2
    xp = jnp.pad(x, ((0, 0), (0, 0), (p, p), (p, p), (p, p)))
    taps = [xp[:, :, kd:kd + D, kh:kh + H, kw:kw + W]
            for kd in range(k) for kh in range(k) for kw in range(k)]
    pt = jnp.stack(taps, axis=2)                      # (B, C, k^3, D, H, W)
    return pt.reshape(B, C * k ** 3, D * H * W)


def multi_scale_fusion_block(x, params, scales):
    """Functional equivalent of MultiScaleFusionBlock.forward (inference)."""
    B, C, D, H, W = x.shape
    P = D * H * W
    S = len(scales)
    assert all(s % 2 == 1 for s in scales), "even kernel sizes change spatial dims"

    # --- layout plumbing (pure data movement, done once in the wrapper) ------
    patches = [_im2col_3d(x, s) for s in scales]                          # (B, C*s^3, P)
    wconv = [params[f"conv{i}_w"].reshape(C, C * s ** 3)
             for i, s in enumerate(scales)]                               # (C, C*s^3)
    bconv = [params[f"conv{i}_b"].reshape(C, 1) for i in range(S)]        # (C, 1)
    wfuse = params["fusion_w"].reshape(C, S * C)                          # (C, S*C)
    wfuse_chunks = [wfuse[:, i * C:(i + 1) * C] for i in range(S)]        # (C, C)
    bfuse = params["fusion_b"].reshape(C, 1)                              # (C, 1)

    # lane-dense pixel tiling (multiple of 128 whenever possible)
    if P % 512 == 0:
        TILE_P = min(P, 512)
    elif P % 256 == 0:
        TILE_P = 256
    elif P % 128 == 0:
        TILE_P = 128
    else:
        TILE_P = P
    grid = (B, P // TILE_P)

    in_specs = (
        [pl.BlockSpec((1, C * s ** 3, TILE_P), lambda b, j: (b, 0, j)) for s in scales]
        + [pl.BlockSpec((C, C * s ** 3), lambda b, j: (0, 0)) for s in scales]
        + [pl.BlockSpec((C, 1), lambda b, j: (0, 0)) for _ in scales]
        + [pl.BlockSpec((C, C), lambda b, j: (0, 0)) for _ in scales]
        + [pl.BlockSpec((C, 1), lambda b, j: (0, 0))]
    )

    out = pl.pallas_call(
        _make_msfb_kernel(S, C),
        out_shape=jax.ShapeDtypeStruct((B, C, P), x.dtype),
        grid=grid,
        in_specs=in_specs,
        out_specs=pl.BlockSpec((1, C, TILE_P), lambda b, j: (b, 0, j)),
        compiler_params=pltpu.CompilerParams(
            dimension_semantics=("parallel", "parallel")),
    )(*patches, *wconv, *bconv, *wfuse_chunks, bfuse)

    return out.reshape(B, C, D, H, W)


# ----------------------------------------------------------------------------
# Pure-JAX reference (independent check via lax conv)
# ----------------------------------------------------------------------------
def reference_msfb(x, params, scales):
    def conv3d(inp, w, b, pad):
        out = jax.lax.conv_general_dilated(
            inp, w, window_strides=(1, 1, 1), padding=[(pad, pad)] * 3,
            dimension_numbers=("NCDHW", "OIDHW", "NCDHW"),
            precision=jax.lax.Precision.HIGHEST)
        return out + b[None, :, None, None, None]

    feats = [conv3d(x, params[f"conv{i}_w"], params[f"conv{i}_b"], s // 2)
             for i, s in enumerate(scales)]
    cat = jnp.concatenate(feats, axis=1)
    return conv3d(cat, params["fusion_w"], params["fusion_b"], 0)


# ----------------------------------------------------------------------------
# Main
# ----------------------------------------------------------------------------
if __name__ == "__main__":
    B, C, D, H, W = 2, 4, 8, 8, 8
    SCALES = (1, 3)

    key = jax.random.PRNGKey(0)
    keys = jax.random.split(key, 2 * len(SCALES) + 3)

    params = {}
    for i, s in enumerate(SCALES):
        fan_in = C * s ** 3
        params[f"conv{i}_w"] = (jax.random.normal(keys[2 * i], (C, C, s, s, s),
                                                  jnp.float32) / math.sqrt(fan_in))
        params[f"conv{i}_b"] = jax.random.normal(keys[2 * i + 1], (C,), jnp.float32) * 0.05
    params["fusion_w"] = (jax.random.normal(keys[-3], (C, len(SCALES) * C, 1, 1, 1),
                                            jnp.float32) / math.sqrt(len(SCALES) * C))
    params["fusion_b"] = jax.random.normal(keys[-2], (C,), jnp.float32) * 0.05

    x = jax.random.normal(keys[-1], (B, C, D, H, W), jnp.float32)

    @jax.jit
    def fwd(x_, params_):
        return multi_scale_fusion_block(x_, params_, SCALES)

    out = jax.block_until_ready(fwd(x, params))
    ref = reference_msfb(x, params, SCALES)

    assert out.shape == (B, C, D, H, W)
    assert jnp.allclose(out, ref, atol=1e-3, rtol=1e-3), "mismatch vs reference"

    print("KERNEL_OK")
</pallas_src>

<mosaic_0001>
module attributes {stable_mosaic.version = 11 : i64} {
  func.func @kernel(%arg0: i32, %arg1: i32, %arg2: memref<1x4x512xf32, #tpu.memory_space<vmem>>, %arg3: memref<1x108x512xf32, #tpu.memory_space<vmem>>, %arg4: memref<4x4xf32, #tpu.memory_space<vmem>>, %arg5: memref<4x108xf32, #tpu.memory_space<vmem>>, %arg6: memref<4x1xf32, #tpu.memory_space<vmem>>, %arg7: memref<4x1xf32, #tpu.memory_space<vmem>>, %arg8: memref<4x4xf32, #tpu.memory_space<vmem>>, %arg9: memref<4x4xf32, #tpu.memory_space<vmem>>, %arg10: memref<4x1xf32, #tpu.memory_space<vmem>>, %arg11: memref<1x4x512xf32, #tpu.memory_space<vmem>>) attributes {dimension_semantics = [#tpu.dimension_semantics<parallel>, #tpu.dimension_semantics<parallel>], iteration_bounds = array<i64: 2, 1>, scalar_prefetch = 0 : i64, scratch_operands = 0 : i64, tpu.core_type = #tpu.core_type<tc>, window_params = [{transform_indices = @transform_0, window_bounds = array<i64: 1, 4, 512>}, {transform_indices = @transform_1, window_bounds = array<i64: 1, 108, 512>}, {pipeline_mode = #tpu.pipeline_mode<synchronous>, transform_indices = @transform_2, window_bounds = array<i64: 4, 4>}, {pipeline_mode = #tpu.pipeline_mode<synchronous>, transform_indices = @transform_3, window_bounds = array<i64: 4, 108>}, {pipeline_mode = #tpu.pipeline_mode<synchronous>, transform_indices = @transform_4, window_bounds = array<i64: 4, 1>}, {pipeline_mode = #tpu.pipeline_mode<synchronous>, transform_indices = @transform_5, window_bounds = array<i64: 4, 1>}, {pipeline_mode = #tpu.pipeline_mode<synchronous>, transform_indices = @transform_6, window_bounds = array<i64: 4, 4>}, {pipeline_mode = #tpu.pipeline_mode<synchronous>, transform_indices = @transform_7, window_bounds = array<i64: 4, 4>}, {pipeline_mode = #tpu.pipeline_mode<synchronous>, transform_indices = @transform_8, window_bounds = array<i64: 4, 1>}, {transform_indices = @transform_9, window_bounds = array<i64: 1, 4, 512>}]} {
    %cst = arith.constant 0.000000e+00 : f32
    %0 = vector.broadcast %cst : f32 to vector<4x512xf32>
    %c0 = arith.constant 0 : index
    %c0_0 = arith.constant 0 : index
    %1 = vector.load %arg4[%c0, %c0_0] : memref<4x4xf32, #tpu.memory_space<vmem>>, vector<4x4xf32>
    %c0_1 = arith.constant 0 : index
    %c0_2 = arith.constant 0 : index
    %c0_3 = arith.constant 0 : index
    %2 = vector.load %arg2[%c0_1, %c0_2, %c0_3] : memref<1x4x512xf32, #tpu.memory_space<vmem>>, vector<1x4x512xf32>
    %3 = vector.shape_cast %2 : vector<1x4x512xf32> to vector<4x512xf32>
    %cst_4 = arith.constant dense<0.000000e+00> : vector<4x512xf32>
    %4 = tpu.matmul %1, %3, %cst_4 {dimension_numbers = #tpu.dot_dimension_numbers<[1], [0], [0], [1], [0, 0, 1, 1], [], []>} : vector<4x4xf32>, vector<4x512xf32>, vector<4x512xf32> -> vector<4x512xf32>
    %c0_5 = arith.constant 0 : index
    %c0_6 = arith.constant 0 : index
    %5 = vector.load %arg6[%c0_5, %c0_6] : memref<4x1xf32, #tpu.memory_space<vmem>>, vector<4x1xf32>
    %6 = vector.broadcast %5 : vector<4x1xf32> to vector<4x512xf32>
    %7 = arith.addf %4, %6 : vector<4x512xf32>
    %c0_7 = arith.constant 0 : index
    %c0_8 = arith.constant 0 : index
    %8 = vector.load %arg8[%c0_7, %c0_8] : memref<4x4xf32, #tpu.memory_space<vmem>>, vector<4x4xf32>
    %cst_9 = arith.constant dense<0.000000e+00> : vector<4x512xf32>
    %9 = tpu.matmul %8, %7, %cst_9 {dimension_numbers = #tpu.dot_dimension_numbers<[1], [0], [0], [1], [0, 0, 1, 1], [], []>} : vector<4x4xf32>, vector<4x512xf32>, vector<4x512xf32> -> vector<4x512xf32>
    %10 = arith.addf %0, %9 : vector<4x512xf32>
    %c0_10 = arith.constant 0 : index
    %c0_11 = arith.constant 0 : index
    %11 = vector.load %arg5[%c0_10, %c0_11] : memref<4x108xf32, #tpu.memory_space<vmem>>, vector<4x108xf32>
    %c0_12 = arith.constant 0 : index
    %c0_13 = arith.constant 0 : index
    %c0_14 = arith.constant 0 : index
    %12 = vector.load %arg3[%c0_12, %c0_13, %c0_14] : memref<1x108x512xf32, #tpu.memory_space<vmem>>, vector<1x108x512xf32>
    %13 = vector.shape_cast %12 : vector<1x108x512xf32> to vector<108x512xf32>
    %cst_15 = arith.constant dense<0.000000e+00> : vector<4x512xf32>
    %14 = tpu.matmul %11, %13, %cst_15 {dimension_numbers = #tpu.dot_dimension_numbers<[1], [0], [0], [1], [0, 0, 1, 1], [], []>} : vector<4x108xf32>, vector<108x512xf32>, vector<4x512xf32> -> vector<4x512xf32>
    %c0_16 = arith.constant 0 : index
    %c0_17 = arith.constant 0 : index
    %15 = vector.load %arg7[%c0_16, %c0_17] : memref<4x1xf32, #tpu.memory_space<vmem>>, vector<4x1xf32>
    %16 = vector.broadcast %15 : vector<4x1xf32> to vector<4x512xf32>
    %17 = arith.addf %14, %16 : vector<4x512xf32>
    %c0_18 = arith.constant 0 : index
    %c0_19 = arith.constant 0 : index
    %18 = vector.load %arg9[%c0_18, %c0_19] : memref<4x4xf32, #tpu.memory_space<vmem>>, vector<4x4xf32>
    %cst_20 = arith.constant dense<0.000000e+00> : vector<4x512xf32>
    %19 = tpu.matmul %18, %17, %cst_20 {dimension_numbers = #tpu.dot_dimension_numbers<[1], [0], [0], [1], [0, 0, 1, 1], [], []>} : vector<4x4xf32>, vector<4x512xf32>, vector<4x512xf32> -> vector<4x512xf32>
    %20 = arith.addf %10, %19 : vector<4x512xf32>
    %c0_21 = arith.constant 0 : index
    %c0_22 = arith.constant 0 : index
    %21 = vector.load %arg10[%c0_21, %c0_22] : memref<4x1xf32, #tpu.memory_space<vmem>>, vector<4x1xf32>
    %22 = vector.broadcast %21 : vector<4x1xf32> to vector<4x512xf32>
    %23 = arith.addf %20, %22 : vector<4x512xf32>
    %c0_23 = arith.constant 0 : index
    %c0_24 = arith.constant 0 : index
    %c0_25 = arith.constant 0 : index
    %24 = vector.load %arg11[%c0_23, %c0_24, %c0_25] : memref<1x4x512xf32, #tpu.memory_space<vmem>>, vector<1x4x512xf32>
    %25 = vector.shape_cast %24 : vector<1x4x512xf32> to vector<4x512xf32>
    %26 = vector.shape_cast %23 : vector<4x512xf32> to vector<1x4x512xf32>
    tpu.vector_store %arg11[%c0_23, %c0_24, %c0_25], %26 {strides = array<i32>} : memref<1x4x512xf32, #tpu.memory_space<vmem>>, vector<1x4x512xf32>,
    return
  }
  func.func @transform_0(%arg0: i32, %arg1: i32) -> (i32, i32, i32) {
    %c0_i32 = arith.constant 0 : i32
    %c0_i32_0 = arith.constant 0 : i32
    return %arg0, %c0_i32, %arg1 : i32, i32, i32
  }
  func.func @transform_1(%arg0: i32, %arg1: i32) -> (i32, i32, i32) {
    %c0_i32 = arith.constant 0 : i32
    %c0_i32_0 = arith.constant 0 : i32
    return %arg0, %c0_i32, %arg1 : i32, i32, i32
  }
  func.func @transform_2(%arg0: i32, %arg1: i32) -> (i32, i32) {
    %c0_i32 = arith.constant 0 : i32
    %c0_i32_0 = arith.constant 0 : i32
    %c0_i32_1 = arith.constant 0 : i32
    return %c0_i32, %c0_i32_0 : i32, i32
  }
  func.func @transform_3(%arg0: i32, %arg1: i32) -> (i32, i32) {
    %c0_i32 = arith.constant 0 : i32
    %c0_i32_0 = arith.constant 0 : i32
    %c0_i32_1 = arith.constant 0 : i32
    return %c0_i32, %c0_i32_0 : i32, i32
  }
  func.func @transform_4(%arg0: i32, %arg1: i32) -> (i32, i32) {
    %c0_i32 = arith.constant 0 : i32
    %c0_i32_0 = arith.constant 0 : i32
    %c0_i32_1 = arith.constant 0 : i32
    return %c0_i32, %c0_i32_0 : i32, i32
  }
  func.func @transform_5(%arg0: i32, %arg1: i32) -> (i32, i32) {
    %c0_i32 = arith.constant 0 : i32
    %c0_i32_0 = arith.constant 0 : i32
    %c0_i32_1 = arith.constant 0 : i32
    return %c0_i32, %c0_i32_0 : i32, i32
  }
  func.func @transform_6(%arg0: i32, %arg1: i32) -> (i32, i32) {
    %c0_i32 = arith.constant 0 : i32
    %c0_i32_0 = arith.constant 0 : i32
    %c0_i32_1 = arith.constant 0 : i32
    return %c0_i32, %c0_i32_0 : i32, i32
  }
  func.func @transform_7(%arg0: i32, %arg1: i32) -> (i32, i32) {
    %c0_i32 = arith.constant 0 : i32
    %c0_i32_0 = arith.constant 0 : i32
    %c0_i32_1 = arith.constant 0 : i32
    return %c0_i32, %c0_i32_0 : i32, i32
  }
  func.func @transform_8(%arg0: i32, %arg1: i32) -> (i32, i32) {
    %c0_i32 = arith.constant 0 : i32
    %c0_i32_0 = arith.constant 0 : i32
    %c0_i32_1 = arith.constant 0 : i32
    return %c0_i32, %c0_i32_0 : i32, i32
  }
  func.func @transform_9(%arg0: i32, %arg1: i32) -> (i32, i32, i32) {
    %c0_i32 = arith.constant 0 : i32
    %c0_i32_0 = arith.constant 0 : i32
    return %arg0, %c0_i32, %arg1 : i32, i32, i32
  }
}

</mosaic_0001>

<bundles_post_ra>
// kernel: fwd.1
= control target key start
LH: loop header
LB: loop body
LE: loop exit
PB: predicated region body
PF: predicated region fallthrough
CT: control target
= control target key end

     0   :  { %s1449_s30 = smov 0   ;;  %s1451_s10 = smov 0   ;;  %s1599_s0 = inlined_call_operand.vmem [shape: f32[2,4,512], index: 0, kind: input, shape index: {}]   ;;  %s1600_s1 = inlined_call_operand.vmem [shape: f32[2,108,512], index: 1, kind: input, shape index: {}]   ;;  %s1601_s2 = inlined_call_operand.vmem [shape: f32[4,4], index: 2, kind: input, shape index: {}]   ;;  %s1602_s3 = inlined_call_operand.vmem [shape: f32[4,108], index: 3, kind: input, shape index: {}]   ;;  %s1603_s4 = inlined_call_operand.vmem [shape: f32[4,1], index: 4, kind: input, shape index: {}]   ;;  %s1604_s5 = inlined_call_operand.vmem [shape: f32[4,1], index: 5, kind: input, shape index: {}]   ;;  %s1605_s6 = inlined_call_operand.vmem [shape: f32[4,4], index: 6, kind: input, shape index: {}]   ;;  %s1606_s7 = inlined_call_operand.vmem [shape: f32[4,4], index: 7, kind: input, shape index: {}]   ;;  %s1607_s8 = inlined_call_operand.vmem [shape: f32[4,1], index: 8, kind: input, shape index: {}]   ;;  %s1608_s9 = inlined_call_operand.vmem [shape: f32[2,4,512], index: 9, kind: output, shape index: {}]  }
   0x1   :  { %s1453_s11 = smov 0  }
   0x2 LB: > { %s31_s12 = sadd.s32 1, %s1390_s10  ;;  %p1242_p0 = scmp.ge.s32.totalorder %s1394_s11, 1  ;;  %s1394_s11 = sphi %s1453_s11, %s19_s11   ;;  %s1390_s10 = sphi %s1451_s10, %s1610_s10   ;;  %s1386_s30 = sphi %s1449_s30, %s1609_s30  }
   0x3   : > { %p33_p1 = scmp.ge.s32.totalorder %s31_s12, 2  ;;  %p325_p2 = scmp.lt.s32.totalorder %s1394_s11, 3 }
   0x5   : > { %s1612_s12 = smov (%p33_p1, %s31_s12), 0  ;;  %p326_p3 = pnand %p1242_p0, %p325_p2 }
   0x6   : > { %p379_p4 = scmp.lt.s32.totalorder (!%p326_p3), %s1386_s30, 1  ;;  %v1396_v0 = vmov (!%p326_p3), 0.0   ;;  %v1397_v1 = vmov (!%p326_p3), 0   ;;  %v634_v2 = vld [vmem:[%s1604_s5] sm:$0xf] (!%p326_p3)  ;;  %vm425_vm0 = vcmask (!%p326_p3), 1043456  }
   0x7   : > { %329 = sbr.rel (%p326_p3) target bundleno = 494 (0x1ee), region = 56  ;;  %498 = vmatprep.mubr.f32.mxu0 (!%p326_p3), %v1396_v0  ;;  %569 = vmatprep.mubr.f32.mxu1 (!%p326_p3), %v1396_v0  ;;  %v411_v3 = vld [vmem:[%s1603_s4] sm:$0xf] (!%p326_p3)  ;;  %vm421_vm1 = vcmask (!%p326_p3), 31744   ;;  %vm1398_vm2 = vmmov (!%p326_p3), 1   ;;  %vm640_vm4 = vcmask (!%p326_p3), 883712  }
   0x8   : > { %1368 = vset.pattern.permute.xlu0 (!%p326_p3), %v1397_v1  ;;  %1369 = vset.pattern.permute.xlu1 (!%p326_p3), %v1397_v1  ;;  %v408_v6 = vld [vmem:[%s1601_s2] sm:$0xf] (!%p326_p3)  ;;  %vm1301_vm3 = vmpackc.low (!%p326_p3), %vm425_vm0, %vm1398_vm2 }
   0x9   : > { %637 = vperm.xlu0 (!%p326_p3), %1368, %v634_v2  }
   0xd   : > { %414 = vperm.xlu0 (!%p326_p3), %1368, %v411_v3  }
   0xe   : > { %s1614_s30 = smov (!%p379_p4, %s1386_s30), 1 }
   0xf   : > { %s1274_s15 = sshll.u32 %s1614_s30, 4  ;;  %s1340_s16 = smul.u32 448, %s1614_s30 }
  0x10   : > { %s386_s21 = scalar_lea.vmem %s1599_s0, %s1274_s15 }
  0x11   : > { %s1487_s24 = scalar_lea.vmem %s1600_s1, %s1340_s16  ;;  %v409_v4 = vld [vmem:[%s386_s21] sm:$0xff]  ;;  %v410_v5 = vld [vmem:[%s386_s21 + $0x8] sm:$0xff]  ;;  %s406_s21 = scalar_lea.vmem %s1608_s9, %s1274_s15 }
  0x12   : > { %v419_v7 = vcombine.high %v409_v4, %v409_v4  ;;  %v420_v8 = vcombine.high %v410_v5, %v410_v5  ;;  %v579_v9 = vld [vmem:[%s1487_s24 + $0x8] sm:$0xff]  ;;  %v581_v11 = vld [vmem:[%s1487_s24 + $0x18] sm:$0xff]  ;;  %v578_v14 = vld [vmem:[%s1487_s24] sm:$0xff] }
  0x13   : > { %v583_v10 = vld [vmem:[%s1487_s24 + $0x28] sm:$0xff]  ;;  %v585_v13 = vld [vmem:[%s1487_s24 + $0x38] sm:$0xff]  ;;  %v582_v15 = vld [vmem:[%s1487_s24 + $0x20] sm:$0xff] }
  0x14   : > { %v1276_v12 = vpack.c.bf16 %v583_v10, %v579_v9  ;;  %1248 = vmatprep.subr.msk.mxu0 %vm425_vm0, %v419_v7  ;;  %1251 = vmatprep.subr.msk.mxu1 %vm425_vm0, %v420_v8  ;;  %v1306_v16 = vpack.c.bf16 %v585_v13, %v581_v11  ;;  %v1278_v17 = vpack.c.bf16 %v582_v15, %v578_v14  ;;  %v580_v18 = vld [vmem:[%s1487_s24 + $0x10] sm:$0xff]  ;;  %v587_v20 = vld [vmem:[%s1487_s24 + $0x48] sm:$0xff]  ;;  %v589_v23 = vld [vmem:[%s1487_s24 + $0x58] sm:$0xff] }
  0x15   : > { %v584_v19 = vld [vmem:[%s1487_s24 + $0x30] sm:$0xff]  ;;  %1249 = vmatpush1.msk.msra.mxu0 %vm425_vm0, %v409_v4  ;;  %1252 = vmatpush1.msk.msra.mxu1 %vm425_vm0, %v410_v5  ;;  %v591_v22 = vld [vmem:[%s1487_s24 + $0x68] sm:$0xff]  ;;  %v593_v24 = vld [vmem:[%s1487_s24 + $0x78] sm:$0xff] }
  0x16   : > { %v1308_v21 = vpack.c.bf16 %v584_v19, %v580_v18  ;;  %1250 = vmatmul.mubr.msk.f32.vlgmr.msra.gmra.mrb[0].mxu0 %vm421_vm1, %v408_v6  ;;  %1253 = vmatmul.mubr.msk.f32.vlgmr.msra.gmra.mrb[0].mxu1 %vm421_vm1, %v408_v6  ;;  %v1280_v25 = vpack.c.bf16 %v591_v22, %v587_v20  ;;  %v1310_v26 = vpack.c.bf16 %v593_v24, %v589_v23  ;;  %v586_v27 = vld [vmem:[%s1487_s24 + $0x40] sm:$0xff]  ;;  %v588_v29 = vld [vmem:[%s1487_s24 + $0x50] sm:$0xff]  ;;  %v595_v31 = vld [vmem:[%s1487_s24 + $0x88] sm:$0xff] }
  0x17   : > { %v590_v28 = vld [vmem:[%s1487_s24 + $0x60] sm:$0xff]  ;;  %1277 = vmatprep.subr.bf16.mxu0 %v1276_v12  ;;  %1307 = vmatprep.subr.bf16.mxu1 %v1306_v16  ;;  %v592_v30 = vld [vmem:[%s1487_s24 + $0x70] sm:$0xff]  ;;  %v599_v32 = vld [vmem:[%s1487_s24 + $0xa8] sm:$0xff] }
  0x18   : > { %1279 = vmatpush1.bf16.msra.mxu0 %v1278_v17  ;;  %1309 = vmatpush1.bf16.msra.mxu1 %v1308_v21  ;;  %v1282_v33 = vpack.c.bf16 %v590_v28, %v586_v27  ;;  %v1312_v34 = vpack.c.bf16 %v592_v30, %v588_v29  ;;  %v597_v35 = vld [vmem:[%s1487_s24 + $0x98] sm:$0xff]  ;;  %v594_v37 = vld [vmem:[%s1487_s24 + $0x80] sm:$0xff]  ;;  %v1284_v38 = vpack.c.bf16 %v599_v32, %v595_v31  ;;  %v596_v41 = vld [vmem:[%s1487_s24 + $0x90] sm:$0xff] }
  0x19   : > { %v601_v36 = vld [vmem:[%s1487_s24 + $0xb8] sm:$0xff]  ;;  %1281 = vmatprep.subr.bf16.mxu0 %v1280_v25  ;;  %1311 = vmatprep.subr.bf16.mxu1 %v1310_v26  ;;  %v598_v40 = vld [vmem:[%s1487_s24 + $0xa0] sm:$0xff]  ;;  %v600_v42 = vld [vmem:[%s1487_s24 + $0xb0] sm:$0xff] }
  0x1a   : > { %v1314_v39 = vpack.c.bf16 %v601_v36, %v597_v35  ;;  %v603_v43 = vld [vmem:[%s1487_s24 + $0xc8] sm:$0xff]  ;;  %v605_v45 = vld [vmem:[%s1487_s24 + $0xd8] sm:$0xff]  ;;  %720 = vmatprep.mubr.f32.mxu0 %v1396_v0  ;;  %791 = vmatprep.mubr.f32.mxu1 %v1396_v0  ;;  %v1286_v47 = vpack.c.bf16 %v598_v40, %v594_v37  ;;  %v1316_v48 = vpack.c.bf16 %v600_v42, %v596_v41  ;;  %v602_v49 = vld [vmem:[%s1487_s24 + $0xc0] sm:$0xff] }
  0x1b   : > { %v607_v44 = vld [vmem:[%s1487_s24 + $0xe8] sm:$0xff]  ;;  %v609_v46 = vld [vmem:[%s1487_s24 + $0xf8] sm:$0xff]  ;;  %v606_v50 = vld [vmem:[%s1487_s24 + $0xe0] sm:$0xff] }
  0x1c   : > { %1283 = vmatpush1.bf16.msra.mxu0 %v1282_v33  ;;  %1313 = vmatpush1.bf16.msra.mxu1 %v1312_v34  ;;  %v1288_v51 = vpack.c.bf16 %v607_v44, %v603_v43  ;;  %v1318_v52 = vpack.c.bf16 %v609_v46, %v605_v45  ;;  %v604_v53 = vld [vmem:[%s1487_s24 + $0xd0] sm:$0xff]  ;;  %v611_v55 = vld [vmem:[%s1487_s24 + $0x108] sm:$0xff]  ;;  %v613_v57 = vld [vmem:[%s1487_s24 + $0x118] sm:$0xff]  ;;  %v1290_v59 = vpack.c.bf16 %v606_v50, %v602_v49 }
  0x1d   : > { %1285 = vmatprep.subr.bf16.mxu0 %v1284_v38  ;;  %1315 = vmatprep.subr.bf16.mxu1 %v1314_v39  ;;  %v608_v54 = vld [vmem:[%s1487_s24 + $0xf0] sm:$0xff]  ;;  %v615_v56 = vld [vmem:[%s1487_s24 + $0x128] sm:$0xff]  ;;  %v617_v58 = vld [vmem:[%s1487_s24 + $0x138] sm:$0xff] }
  0x1e   : > { %v1320_v60 = vpack.c.bf16 %v608_v54, %v604_v53  ;;  %v610_v61 = vld [vmem:[%s1487_s24 + $0x100] sm:$0xff]  ;;  %v1292_v63 = vpack.c.bf16 %v615_v56, %v611_v55  ;;  %v1322_v1 = vpack.c.bf16 %v617_v58, %v613_v57  ;;  %v612_v2 = vld [vmem:[%s1487_s24 + $0x110] sm:$0xff]  ;;  %v619_v4 = vld [vmem:[%s1487_s24 + $0x148] sm:$0xff] }
  0x1f   : > { %v614_v62 = vld [vmem:[%s1487_s24 + $0x120] sm:$0xff]  ;;  %v616_v3 = vld [vmem:[%s1487_s24 + $0x130] sm:$0xff]  ;;  %v623_v5 = vld [vmem:[%s1487_s24 + $0x168] sm:$0xff] }
  0x20   : > { %1287 = vmatpush1.bf16.msra.mxu0 %v1286_v47  ;;  %1317 = vmatpush1.bf16.msra.mxu1 %v1316_v48  ;;  %v621_v6 = vld [vmem:[%s1487_s24 + $0x158] sm:$0xff]  ;;  %v1294_v8 = vpack.c.bf16 %v614_v62, %v610_v61  ;;  %v1324_v9 = vpack.c.bf16 %v616_v3, %v612_v2  ;;  %v618_v10 = vld [vmem:[%s1487_s24 + $0x140] sm:$0xff]  ;;  %v1296_v12 = vpack.c.bf16 %v623_v5, %v619_v4  ;;  %v620_v14 = vld [vmem:[%s1487_s24 + $0x150] sm:$0xff] }
  0x21   : > { %1289 = vmatprep.subr.bf16.mxu0 %v1288_v51  ;;  %1319 = vmatprep.subr.bf16.mxu1 %v1318_v52  ;;  %v625_v7 = vld [vmem:[%s1487_s24 + $0x178] sm:$0xff]  ;;  %v622_v11 = vld [vmem:[%s1487_s24 + $0x160] sm:$0xff]  ;;  %v624_v15 = vld [vmem:[%s1487_s24 + $0x170] sm:$0xff] }
  0x22   : > { %v1326_v13 = vpack.c.bf16 %v625_v7, %v621_v6  ;;  %v627_v16 = vld [vmem:[%s1487_s24 + $0x188] sm:$0xff]  ;;  %v629_v18 = vld [vmem:[%s1487_s24 + $0x198] sm:$0xff]  ;;  %v1298_v20 = vpack.c.bf16 %v622_v11, %v618_v10  ;;  %v1328_v21 = vpack.c.bf16 %v624_v15, %v620_v14  ;;  %v626_v22 = vld [vmem:[%s1487_s24 + $0x180] sm:$0xff] }
  0x23   : > { %v631_v17 = vld [vmem:[%s1487_s24 + $0x1a8] sm:$0xf]  ;;  %v633_v19 = vld [vmem:[%s1487_s24 + $0x1b8] sm:$0xf]  ;;  %v630_v25 = vld [vmem:[%s1487_s24 + $0x1a0] sm:$0xf] }
  0x24   : > { %1291 = vmatpush1.bf16.msra.mxu0 %v1290_v59  ;;  %1321 = vmatpush1.bf16.msra.mxu1 %v1320_v60  ;;  %v1300_v23 = vpack.c.bf16 %v631_v17, %v627_v16  ;;  %v1330_v24 = vpack.c.bf16 %v633_v19, %v629_v18  ;;  %v628_v26 = vld [vmem:[%s1487_s24 + $0x190] sm:$0xff]  ;;  %v1303_v28 = vpack.c.bf16 %v630_v25, %v626_v22  ;;  %v577_v30 = vld [vmem:[%s1602_s3] sm:$0xf] }
  0x25   : > { %1293 = vmatprep.subr.bf16.mxu0 %v1292_v63  ;;  %1323 = vmatprep.subr.bf16.mxu1 %v1322_v1  ;;  %v632_v27 = vld [vmem:[%s1487_s24 + $0x1b0] sm:$0xf]  ;;  %v1113_v31 = vld [vmem:[%s1607_s8] sm:$0xf] }
  0x26   : > { %v1333_v29 = vpack.c.bf16 %v632_v27, %v628_v26  ;;  %1116 = vperm.xlu1 %1369, %v1113_v31   ;;  %v798_v46 = vld [vmem:[%s1606_s7] sm:$0xf] }
  0x27   : > { %v576_v51 = vld [vmem:[%s1605_s6] sm:$0xf] }
  0x28   : > { %1295 = vmatpush1.bf16.msra.mxu0 %v1294_v8  ;;  %1325 = vmatpush1.bf16.msra.mxu1 %v1324_v9 }
  0x29   : > { %1297 = vmatprep.subr.bf16.mxu0 %v1296_v12  ;;  %1327 = vmatprep.subr.bf16.mxu1 %v1326_v13 }
  0x2c   : > { %1299 = vmatpush1.bf16.msra.mxu0 %v1298_v20  ;;  %1329 = vmatpush1.bf16.msra.mxu1 %v1328_v21 }
  0x2d   : > { %1302 = vmatprep.subr.msk.bf16.mxu0 %vm1301_vm3, %v1300_v23  ;;  %1332 = vmatprep.subr.msk.bf16.mxu1 %vm1301_vm3, %v1330_v24 }
  0x30   : > { %1305 = vmatpush1.bf16.msk.msra.mxu0 %vm1301_vm3, %v1303_v28  ;;  %1335 = vmatpush1.bf16.msk.msra.mxu1 %vm1301_vm3, %v1333_v29 }
  0x33   : > { %1256 = vmatmul.mubr.msk.f32.vlgmr.msra.gmra.mrb[2].mxu0 %vm640_vm4, %v577_v30  ;;  %1259 = vmatmul.mubr.msk.f32.vlgmr.msra.gmra.mrb[2].mxu1 %vm640_vm4, %v577_v30 }
  0x34   : > { %878 = vmatprep.mubr.f32.mxu0 %v1396_v0  ;;  %949 = vmatprep.mubr.f32.mxu1 %v1396_v0 }
  0x88   : > { %v638_v36 = vpop.permute.xlu0 %637 }
  0x8c   : > { %v415_v41 = vpop.permute.xlu0 %414 }
  0xa5   : > { %v1117_v52 = vpop.permute.xlu1 %1116 }
  0xe9   : > { %v500_v32 = vpop.f32.mrb[0].mxu0  ;;  %v571_v33 = vpop.f32.mrb[0].mxu1 }
  0xea   : > { %v502_v34 = vpop.f32.mrb[1].mxu0  ;;  %v573_v35 = vpop.f32.mrb[1].mxu1  ;;  %v501_v49 = vadd.f32 %v500_v32, %v415_v41  ;;  %v572_v50 = vadd.f32 %v571_v33, %v415_v41 }
  0xeb   : > { %v503_v47 = vadd.f32 %v502_v34, %v415_v41  ;;  %v574_v48 = vadd.f32 %v573_v35, %v415_v41 }
 0x106   : > { %v722_v37 = vpop.f32.mrb[2].mxu0  ;;  %v793_v38 = vpop.f32.mrb[2].mxu1 }
 0x107   : > { %v724_v39 = vpop.f32.mrb[3].mxu0  ;;  %v795_v40 = vpop.f32.mrb[3].mxu1  ;;  %v723_v44 = vadd.f32 %v722_v37, %v638_v36  ;;  %v794_v45 = vadd.f32 %v793_v38, %v638_v36 }
 0x108   : > { %v725_v42 = vadd.f32 %v724_v39, %v638_v36  ;;  %v796_v43 = vadd.f32 %v795_v40, %v638_v36 }
 0x10a   : > { %1260 = vmatprep.subr.msk.mxu0 %vm425_vm0, %v725_v42  ;;  %1263 = vmatprep.subr.msk.mxu1 %vm425_vm0, %v796_v43 }
 0x10b   : > { %1261 = vmatpush1.msk.msra.mxu0 %vm425_vm0, %v723_v44  ;;  %1264 = vmatpush1.msk.msra.mxu1 %vm425_vm0, %v794_v45 }
 0x10c   : > { %1262 = vmatmul.mubr.msk.f32.vlgmr.msra.gmra.mrb[4].mxu0 %vm421_vm1, %v798_v46  ;;  %1265 = vmatmul.mubr.msk.f32.vlgmr.msra.gmra.mrb[4].mxu1 %vm421_vm1, %v798_v46 }
 0x10d   : > { %1266 = vmatprep.subr.msk.mxu0 %vm425_vm0, %v503_v47  ;;  %1269 = vmatprep.subr.msk.mxu1 %vm425_vm0, %v574_v48 }
 0x10e   : > { %1267 = vmatpush1.msk.msra.mxu0 %vm425_vm0, %v501_v49  ;;  %1270 = vmatpush1.msk.msra.mxu1 %vm425_vm0, %v572_v50 }
 0x10f   : > { %1035 = vmatprep.mubr.f32.mxu0 %v1396_v0  ;;  %1106 = vmatprep.mubr.f32.mxu1 %v1396_v0 }
 0x114   : > { %1268 = vmatmul.mubr.msk.f32.vlgmr.msra.gmra.mrb[4].mxu0 %vm421_vm1, %v576_v51  ;;  %1271 = vmatmul.mubr.msk.f32.vlgmr.msra.gmra.mrb[4].mxu1 %vm421_vm1, %v576_v51 }
 0x1e7   : > { %v1037_v53 = vpop.f32.mrb[4].mxu0  ;;  %v1108_v54 = vpop.f32.mrb[4].mxu1 }
 0x1e8   : > { %v1119_v55 = vadd.f32 %v1117_v52, %v1037_v53  ;;  %v1121_v56 = vadd.f32 %v1117_v52, %v1108_v54  ;;  %v1039_v57 = vpop.f32.mrb[5].mxu0  ;;  %v1110_v58 = vpop.f32.mrb[5].mxu1 }
 0x1e9   : > { %v1120_v59 = vadd.f32 %v1117_v52, %v1039_v57  ;;  %v1122_v60 = vadd.f32 %v1117_v52, %v1110_v58 }
 0x1eb   : > { %v1127_v0 = vcombine.low %v1119_v55, %v1120_v59  ;;  %v1128_v61 = vcombine.low %v1121_v56, %v1122_v60 }
 0x1ed   : > { %1131 = vst [vmem:[%s406_s21] sm:$0xff] %v1127_v0  ;;  %1132 = vst [vmem:[%s406_s21 + $0x8] sm:$0xff] %v1128_v61 }
 0x1ee PF: > { %s19_s11 = sadd.s32 1, %s1394_s11   ;;  %s1609_s30 = smov %s1390_s10 }
 0x1ef   : > { %p16_p5 = scmp.ge.s32.totalorder %s19_s11, 4   ;;  %s1610_s10 = smov %s1612_s12 }
 0x1f1   :  { %18 = sbr.rel (!%p16_p5) target bundleno = 2 (0x2), region = 89 }

</bundles_post_ra>
